<compile_context>
chip_gen: v7x
topology: tpu7x:2x2x1
jax: 0.10.0
libtpu: 0.0.40
codegen_flags: <defaults>
</compile_context>

<pallas_src>
import functools

import jax
import jax.numpy as jnp
import numpy as np
from jax import lax
from jax.experimental import pallas as pl
from jax.experimental.pallas import tpu as pltpu

BN_EPS = 1e-5
H1, H2 = 128, 32  # hidden sizes of the reference module


def _round_up8(n):
    return ((n + 7) // 8) * 8


def _actor_critic_kernel(state_ref, action_ref, p_ref, out_ref, *,
                         state_dim, action_dim):
    B = state_ref.shape[0]
    S = state_dim
    A = action_dim

    # Static row offsets into the single parameter slab.
    S_pad = _round_up8(S)
    w2_off = S_pad
    w3_off = S_pad + 256
    sp_off = S_pad + 512

    x = state_ref[...]                                   # [B, S] f32

    w1 = p_ref[0:S, :]                                   # [S, 256]
    w2 = p_ref[w2_off:w2_off + 256, :]                   # [256, 256] block-diag
    w3 = p_ref[w3_off:w3_off + 256, :]                   # [256, 256] block-diag
    b1  = p_ref[sp_off + 0:sp_off + 1, :]                # [1,256] ba1 | bv1
    g1  = p_ref[sp_off + 1:sp_off + 2, :]                # [1,256] gamma1 in 128:256
    be1 = p_ref[sp_off + 2:sp_off + 3, :]                # [1,256] beta1  in 128:256
    b2  = p_ref[sp_off + 3:sp_off + 4, :]                # [1,256] ba2 0:32 | bv2 128:160
    g2  = p_ref[sp_off + 4:sp_off + 5, :]                # [1,256] gamma2 in 128:160
    be2 = p_ref[sp_off + 5:sp_off + 6, :]                # [1,256] beta2  in 128:160
    b3  = p_ref[sp_off + 6:sp_off + 7, :]                # [1,256] ba3 0:A | bv3 @128

    lane1 = lax.broadcasted_iota(jnp.int32, (1, 256), 1)
    is_c1 = lane1 >= H1                                  # critic lanes, layer 1
    is_c2 = (lane1 >= H1) & (lane1 < H1 + H2)            # critic lanes, layer 2

    # ---- layer 1 (both heads in one MXU pass) ----
    y1 = jnp.dot(x, w1, preferred_element_type=jnp.float32) + b1        # [B,256]
    # BatchNorm1d on critic lanes only (training mode: batch mean / biased var),
    # identity on actor lanes -- expressed as a full-width affine, no slicing.
    mu1 = jnp.mean(y1, axis=0, keepdims=True)
    var1 = jnp.mean((y1 - mu1) ** 2, axis=0, keepdims=True)
    a1 = jnp.where(is_c1, g1 * lax.rsqrt(var1 + BN_EPS), 1.0)
    c1 = jnp.where(is_c1, be1 - mu1 * a1, 0.0)
    hc1 = jnp.tanh(y1 * a1 + c1)                                        # [B,256]

    # ---- layer 2 (block-diagonal fused) ----
    y2 = jnp.dot(hc1, w2, preferred_element_type=jnp.float32) + b2      # [B,256]
    mu2 = jnp.mean(y2, axis=0, keepdims=True)
    var2 = jnp.mean((y2 - mu2) ** 2, axis=0, keepdims=True)
    a2 = jnp.where(is_c2, g2 * lax.rsqrt(var2 + BN_EPS), 1.0)
    c2 = jnp.where(is_c2, be2 - mu2 * a2, 0.0)
    hc2 = jnp.tanh(y2 * a2 + c2)                                        # [B,256]

    # ---- layer 3 (block-diagonal fused): logits in lanes 0:A, value at lane 128 ----
    y3 = jnp.dot(hc2, w3, preferred_element_type=jnp.float32) + b3      # [B,256]

    lane_b = lax.broadcasted_iota(jnp.int32, (B, 256), 1)
    neg_big = jnp.float32(-1e30)
    z = jnp.where(lane_b < A, y3, neg_big)               # full-width masked logits

    # Categorical(probs): log_prob(action) and entropy (stable LSE form).
    m = jnp.max(z, axis=-1, keepdims=True)
    e = jnp.exp(z - m)                                   # exactly 0 on masked lanes
    s = jnp.sum(e, axis=-1, keepdims=True)
    inv_s = pl.reciprocal(s, approx=False)               # exact; reused below
    log_z = jnp.log(s) + m
    logp_all = z - log_z                                 # finite everywhere

    act = action_ref[...]                                # [B,1] int32
    logp = jnp.sum(jnp.where(lane_b == act, logp_all, 0.0), axis=-1,
                   keepdims=True)                        # [B,1]
    ent = -jnp.sum(e * logp_all, axis=-1, keepdims=True) * inv_s        # [B,1]

    # Value = critic output living at lane 128 of y3 (masked row-sum, no slice).
    val = jnp.sum(jnp.where(lane_b == H1, y3, 0.0), axis=-1, keepdims=True)

    # Pack the three [B,1] results into one [B,3] output (single store + DMA).
    # TODO(synk): lane-dense (e.g. [3,B]) layout once B grows into the thousands.
    lane3 = lax.broadcasted_iota(jnp.int32, (B, 3), 1)
    out_ref[...] = jnp.where(lane3 == 0, logp, jnp.where(lane3 == 1, val, ent))


@functools.partial(jax.jit, static_argnames=("action_dim",))
def actor_critic_evaluate(state, action, param_slab, *, action_dim):
    """Pallas-backed ActorCritic.evaluate.

    state:      [B, S] float32
    action:     [B]    int32
    param_slab: packed parameter slab from pack_params()
    returns (action_logprobs [B], state_value [B], dist_entropy [B])
    """
    B, S = state.shape
    action = action.reshape(B, 1).astype(jnp.int32)

    inputs = (state, action, param_slab)

    # Advisory cost estimate so XLA can schedule around this tiny custom call.
    flops = 2 * B * 256 * (S + 256 + 256)
    transcendentals = B * (2 * 256 + 256 + 2) + 2 * 256
    bytes_accessed = sum(int(np.prod(a.shape)) * a.dtype.itemsize for a in inputs)
    bytes_accessed += B * 3 * 4
    cost = pl.CostEstimate(flops=flops, transcendentals=transcendentals,
                           bytes_accessed=bytes_accessed)

    out = pl.pallas_call(
        functools.partial(_actor_critic_kernel, state_dim=S,
                          action_dim=action_dim),
        out_shape=jax.ShapeDtypeStruct((B, 3), jnp.float32),
        in_specs=[pl.BlockSpec(memory_space=pltpu.VMEM) for _ in inputs],
        out_specs=pl.BlockSpec(memory_space=pltpu.VMEM),
        cost_estimate=cost,
    )(*inputs)

    return out[:, 0], out[:, 1], out[:, 2]


def pack_params(p, state_dim, action_dim):
    """One-time packing of the natural parameter dict into a single f32 slab.

    Row layout (256 lanes wide):
      [0      : S      ]  W1        (wa1 | wv1)
      [S_pad  : S_pad+256]  W2 block-diag (wa2 rows 0:128 cols 0:32,
                                           wv2 rows 128:256 cols 128:160)
      [+256   : +512   ]  W3 block-diag (wa3 rows 0:32 cols 0:A,
                                          wv3 rows 128:160 col 128)
      [+512   : +519   ]  b1, g1, be1, b2, g2, be2, b3  (one row each)
    """
    A = action_dim
    S = state_dim
    assert 1 <= A <= H1, "packing assumes action_dim <= 128"
    S_pad = _round_up8(S)
    w2_off = S_pad
    w3_off = S_pad + 256
    sp_off = S_pad + 512
    n_rows = sp_off + 8

    slab = np.zeros((n_rows, 256), np.float32)
    # layer 1
    slab[0:S, 0:H1] = np.asarray(p["wa1"])
    slab[0:S, H1:2 * H1] = np.asarray(p["wv1"])
    # layer 2 (block diagonal)
    slab[w2_off:w2_off + H1, 0:H2] = np.asarray(p["wa2"])
    slab[w2_off + H1:w2_off + 2 * H1, H1:H1 + H2] = np.asarray(p["wv2"])
    # layer 3 (block diagonal)
    slab[w3_off:w3_off + H2, 0:A] = np.asarray(p["wa3"])
    slab[w3_off + H1:w3_off + H1 + H2, H1:H1 + 1] = np.asarray(p["wv3"])
    # biases / BN affine params
    slab[sp_off + 0, 0:H1] = np.asarray(p["ba1"][0])
    slab[sp_off + 0, H1:2 * H1] = np.asarray(p["bv1"][0])
    slab[sp_off + 1, H1:2 * H1] = np.asarray(p["g1"][0])
    slab[sp_off + 2, H1:2 * H1] = np.asarray(p["be1"][0])
    slab[sp_off + 3, 0:H2] = np.asarray(p["ba2"][0])
    slab[sp_off + 3, H1:H1 + H2] = np.asarray(p["bv2"][0])
    slab[sp_off + 4, H1:H1 + H2] = np.asarray(p["g2"][0])
    slab[sp_off + 5, H1:H1 + H2] = np.asarray(p["be2"][0])
    slab[sp_off + 6, 0:A] = np.asarray(p["ba3"][0])
    slab[sp_off + 6, H1] = np.asarray(p["bv3"][0, 0])
    return jnp.asarray(slab)


def init_params(key, state_dim, action_dim, hidden=(H1, H2)):
    """Deterministic synthetic init (PyTorch-Linear-style uniform bounds)."""
    h1, h2 = hidden
    ks = jax.random.split(key, 16)

    def lin(kw, kb, fan_in, fan_out):
        bound = 1.0 / np.sqrt(fan_in)
        w = jax.random.uniform(kw, (fan_in, fan_out), jnp.float32, -bound, bound)
        b = jax.random.uniform(kb, (1, fan_out), jnp.float32, -bound, bound)
        return w, b

    wa1, ba1 = lin(ks[0], ks[1], state_dim, h1)
    wa2, ba2 = lin(ks[2], ks[3], h1, h2)
    wa3, ba3 = lin(ks[4], ks[5], h2, action_dim)
    wv1, bv1 = lin(ks[6], ks[7], state_dim, h1)
    wv2, bv2 = lin(ks[8], ks[9], h1, h2)
    wv3, bv3 = lin(ks[10], ks[11], h2, 1)

    # BatchNorm affine params (non-trivial so the path is exercised).
    g1 = 1.0 + 0.1 * jax.random.normal(ks[12], (1, h1), jnp.float32)
    be1 = 0.1 * jax.random.normal(ks[13], (1, h1), jnp.float32)
    g2 = 1.0 + 0.1 * jax.random.normal(ks[14], (1, h2), jnp.float32)
    be2 = 0.1 * jax.random.normal(ks[15], (1, h2), jnp.float32)

    return dict(wa1=wa1, ba1=ba1, wa2=wa2, ba2=ba2, wa3=wa3, ba3=ba3,
                wv1=wv1, bv1=bv1, g1=g1, be1=be1,
                wv2=wv2, bv2=bv2, g2=g2, be2=be2,
                wv3=wv3, bv3=bv3)


def reference_evaluate(state, action, params, action_dim):
    """Pure-JAX reference mirroring the PyTorch module."""
    x = state
    # actor
    h = jnp.tanh(x @ params["wa1"] + params["ba1"])
    h = jnp.tanh(h @ params["wa2"] + params["ba2"])
    z = h @ params["wa3"] + params["ba3"]
    probs = jax.nn.softmax(z, axis=-1)
    logp_all = jnp.log(probs)
    logp = jnp.take_along_axis(logp_all, action[:, None], axis=-1)[:, 0]
    ent = -jnp.sum(probs * logp_all, axis=-1)

    # critic (training-mode BN)
    def bn(v, g, b):
        mu = jnp.mean(v, axis=0, keepdims=True)
        var = jnp.mean((v - mu) ** 2, axis=0, keepdims=True)
        return (v - mu) / jnp.sqrt(var + BN_EPS) * g + b

    v = x @ params["wv1"] + params["bv1"]
    v = jnp.tanh(bn(v, params["g1"], params["be1"]))
    v = v @ params["wv2"] + params["bv2"]
    v = jnp.tanh(bn(v, params["g2"], params["be2"]))
    val = (v @ params["wv3"] + params["bv3"])[:, 0]
    return logp, val, ent


if __name__ == "__main__":
    B, STATE_DIM, ACTION_DIM = 8, 16, 4

    key = jax.random.PRNGKey(0)
    k_param, k_state, k_act = jax.random.split(key, 3)

    params = init_params(k_param, STATE_DIM, ACTION_DIM)
    param_slab = jax.block_until_ready(pack_params(params, STATE_DIM, ACTION_DIM))
    state = jax.random.normal(k_state, (B, STATE_DIM), jnp.float32)
    action = jax.random.randint(k_act, (B,), 0, ACTION_DIM, jnp.int32)

    logp, val, ent = actor_critic_evaluate(state, action, param_slab,
                                           action_dim=ACTION_DIM)
    jax.block_until_ready((logp, val, ent))

    r_logp, r_val, r_ent = reference_evaluate(state, action, params, ACTION_DIM)
    np.testing.assert_allclose(np.asarray(logp), np.asarray(r_logp), atol=1e-5, rtol=1e-5)
    np.testing.assert_allclose(np.asarray(val), np.asarray(r_val), atol=1e-5, rtol=1e-5)
    np.testing.assert_allclose(np.asarray(ent), np.asarray(r_ent), atol=1e-5, rtol=1e-5)

    print("KERNEL_OK")
</pallas_src>

<mosaic_0001>
module attributes {stable_mosaic.version = 11 : i64} {
  func.func @_actor_critic_kernel(%arg0: memref<8x16xf32, #tpu.memory_space<vmem>>, %arg1: memref<8x1xi32, #tpu.memory_space<vmem>>, %arg2: memref<536x256xf32, #tpu.memory_space<vmem>>, %arg3: memref<8x3xf32, #tpu.memory_space<vmem>>) attributes {dimension_semantics = [], scalar_prefetch = 0 : i64, scratch_operands = 0 : i64, tpu.core_type = #tpu.core_type<tc>} {
    %c0 = arith.constant 0 : index
    %c0_0 = arith.constant 0 : index
    %0 = vector.load %arg0[%c0, %c0_0] : memref<8x16xf32, #tpu.memory_space<vmem>>, vector<8x16xf32>
    %c0_1 = arith.constant 0 : index
    %c0_2 = arith.constant 0 : index
    %1 = vector.load %arg2[%c0_1, %c0_2] : memref<536x256xf32, #tpu.memory_space<vmem>>, vector<16x256xf32>
    %c16 = arith.constant 16 : index
    %c0_3 = arith.constant 0 : index
    %2 = vector.load %arg2[%c16, %c0_3] : memref<536x256xf32, #tpu.memory_space<vmem>>, vector<256x256xf32>
    %c272 = arith.constant 272 : index
    %c0_4 = arith.constant 0 : index
    %3 = vector.load %arg2[%c272, %c0_4] : memref<536x256xf32, #tpu.memory_space<vmem>>, vector<256x256xf32>
    %c528 = arith.constant 528 : index
    %c0_5 = arith.constant 0 : index
    %4 = vector.load %arg2[%c528, %c0_5] : memref<536x256xf32, #tpu.memory_space<vmem>>, vector<1x256xf32>
    %c529 = arith.constant 529 : index
    %c0_6 = arith.constant 0 : index
    %5 = vector.load %arg2[%c529, %c0_6] : memref<536x256xf32, #tpu.memory_space<vmem>>, vector<1x256xf32>
    %c530 = arith.constant 530 : index
    %c0_7 = arith.constant 0 : index
    %6 = vector.load %arg2[%c530, %c0_7] : memref<536x256xf32, #tpu.memory_space<vmem>>, vector<1x256xf32>
    %c531 = arith.constant 531 : index
    %c0_8 = arith.constant 0 : index
    %7 = vector.load %arg2[%c531, %c0_8] : memref<536x256xf32, #tpu.memory_space<vmem>>, vector<1x256xf32>
    %c532 = arith.constant 532 : index
    %c0_9 = arith.constant 0 : index
    %8 = vector.load %arg2[%c532, %c0_9] : memref<536x256xf32, #tpu.memory_space<vmem>>, vector<1x256xf32>
    %c533 = arith.constant 533 : index
    %c0_10 = arith.constant 0 : index
    %9 = vector.load %arg2[%c533, %c0_10] : memref<536x256xf32, #tpu.memory_space<vmem>>, vector<1x256xf32>
    %c534 = arith.constant 534 : index
    %c0_11 = arith.constant 0 : index
    %10 = vector.load %arg2[%c534, %c0_11] : memref<536x256xf32, #tpu.memory_space<vmem>>, vector<1x256xf32>
    %11 = tpu.iota {dimensions = array<i32: 1>} : vector<1x256xi32>
    %c128_i32 = arith.constant 128 : i32
    %12 = vector.broadcast %c128_i32 : i32 to vector<1x256xi32>
    %13 = arith.cmpi sge, %11, %12 : vector<1x256xi32>
    %c128_i32_12 = arith.constant 128 : i32
    %14 = vector.broadcast %c128_i32_12 : i32 to vector<1x256xi32>
    %15 = arith.cmpi sge, %11, %14 : vector<1x256xi32>
    %c160_i32 = arith.constant 160 : i32
    %16 = vector.broadcast %c160_i32 : i32 to vector<1x256xi32>
    %17 = arith.cmpi slt, %11, %16 : vector<1x256xi32>
    %18 = arith.andi %15, %17 : vector<1x256xi1>
    %cst = arith.constant dense<0.000000e+00> : vector<8x256xf32>
    %19 = tpu.matmul %0, %1, %cst {dimension_numbers = #tpu.dot_dimension_numbers<[1], [0], [0], [1], [0, 0, 1, 1], [], []>} : vector<8x16xf32>, vector<16x256xf32>, vector<8x256xf32> -> vector<8x256xf32>
    %20 = vector.broadcast %4 : vector<1x256xf32> to vector<8x256xf32>
    %21 = arith.addf %19, %20 : vector<8x256xf32>
    %cst_13 = arith.constant dense<0.000000e+00> : vector<256xf32>
    %22 = vector.multi_reduction <add>, %21, %cst_13 [0] : vector<8x256xf32> to vector<256xf32>
    %23 = vector.shape_cast %22 : vector<256xf32> to vector<1x256xf32>
    %cst_14 = arith.constant 8.000000e+00 : f32
    %24 = vector.broadcast %cst_14 : f32 to vector<1x256xf32>
    %25 = arith.divf %23, %24 : vector<1x256xf32>
    %26 = vector.broadcast %25 : vector<1x256xf32> to vector<8x256xf32>
    %27 = arith.subf %21, %26 : vector<8x256xf32>
    %28 = arith.mulf %27, %27 : vector<8x256xf32>
    %cst_15 = arith.constant dense<0.000000e+00> : vector<256xf32>
    %29 = vector.multi_reduction <add>, %28, %cst_15 [0] : vector<8x256xf32> to vector<256xf32>
    %30 = vector.shape_cast %29 : vector<256xf32> to vector<1x256xf32>
    %cst_16 = arith.constant 8.000000e+00 : f32
    %31 = vector.broadcast %cst_16 : f32 to vector<1x256xf32>
    %32 = arith.divf %30, %31 : vector<1x256xf32>
    %cst_17 = arith.constant 9.99999974E-6 : f32
    %33 = vector.broadcast %cst_17 : f32 to vector<1x256xf32>
    %34 = arith.addf %32, %33 : vector<1x256xf32>
    %35 = math.rsqrt %34 : vector<1x256xf32>
    %36 = arith.mulf %5, %35 : vector<1x256xf32>
    %cst_18 = arith.constant 1.000000e+00 : f32
    %37 = vector.broadcast %cst_18 : f32 to vector<1x256xf32>
    %38 = arith.select %13, %36, %37 : vector<1x256xi1>, vector<1x256xf32>
    %39 = arith.mulf %25, %38 : vector<1x256xf32>
    %40 = arith.subf %6, %39 : vector<1x256xf32>
    %cst_19 = arith.constant 0.000000e+00 : f32
    %41 = vector.broadcast %cst_19 : f32 to vector<1x256xf32>
    %42 = arith.select %13, %40, %41 : vector<1x256xi1>, vector<1x256xf32>
    %43 = vector.broadcast %38 : vector<1x256xf32> to vector<8x256xf32>
    %44 = arith.mulf %21, %43 : vector<8x256xf32>
    %45 = vector.broadcast %42 : vector<1x256xf32> to vector<8x256xf32>
    %46 = arith.addf %44, %45 : vector<8x256xf32>
    %47 = math.tanh %46 : vector<8x256xf32>
    %cst_20 = arith.constant dense<0.000000e+00> : vector<8x256xf32>
    %48 = tpu.matmul %47, %2, %cst_20 {dimension_numbers = #tpu.dot_dimension_numbers<[1], [0], [0], [1], [0, 0, 1, 1], [], []>} : vector<8x256xf32>, vector<256x256xf32>, vector<8x256xf32> -> vector<8x256xf32>
    %49 = vector.broadcast %7 : vector<1x256xf32> to vector<8x256xf32>
    %50 = arith.addf %48, %49 : vector<8x256xf32>
    %cst_21 = arith.constant dense<0.000000e+00> : vector<256xf32>
    %51 = vector.multi_reduction <add>, %50, %cst_21 [0] : vector<8x256xf32> to vector<256xf32>
    %52 = vector.shape_cast %51 : vector<256xf32> to vector<1x256xf32>
    %cst_22 = arith.constant 8.000000e+00 : f32
    %53 = vector.broadcast %cst_22 : f32 to vector<1x256xf32>
    %54 = arith.divf %52, %53 : vector<1x256xf32>
    %55 = vector.broadcast %54 : vector<1x256xf32> to vector<8x256xf32>
    %56 = arith.subf %50, %55 : vector<8x256xf32>
    %57 = arith.mulf %56, %56 : vector<8x256xf32>
    %cst_23 = arith.constant dense<0.000000e+00> : vector<256xf32>
    %58 = vector.multi_reduction <add>, %57, %cst_23 [0] : vector<8x256xf32> to vector<256xf32>
    %59 = vector.shape_cast %58 : vector<256xf32> to vector<1x256xf32>
    %cst_24 = arith.constant 8.000000e+00 : f32
    %60 = vector.broadcast %cst_24 : f32 to vector<1x256xf32>
    %61 = arith.divf %59, %60 : vector<1x256xf32>
    %cst_25 = arith.constant 9.99999974E-6 : f32
    %62 = vector.broadcast %cst_25 : f32 to vector<1x256xf32>
    %63 = arith.addf %61, %62 : vector<1x256xf32>
    %64 = math.rsqrt %63 : vector<1x256xf32>
    %65 = arith.mulf %8, %64 : vector<1x256xf32>
    %cst_26 = arith.constant 1.000000e+00 : f32
    %66 = vector.broadcast %cst_26 : f32 to vector<1x256xf32>
    %67 = arith.select %18, %65, %66 : vector<1x256xi1>, vector<1x256xf32>
    %68 = arith.mulf %54, %67 : vector<1x256xf32>
    %69 = arith.subf %9, %68 : vector<1x256xf32>
    %cst_27 = arith.constant 0.000000e+00 : f32
    %70 = vector.broadcast %cst_27 : f32 to vector<1x256xf32>
    %71 = arith.select %18, %69, %70 : vector<1x256xi1>, vector<1x256xf32>
    %72 = vector.broadcast %67 : vector<1x256xf32> to vector<8x256xf32>
    %73 = arith.mulf %50, %72 : vector<8x256xf32>
    %74 = vector.broadcast %71 : vector<1x256xf32> to vector<8x256xf32>
    %75 = arith.addf %73, %74 : vector<8x256xf32>
    %76 = math.tanh %75 : vector<8x256xf32>
    %cst_28 = arith.constant dense<0.000000e+00> : vector<8x256xf32>
    %77 = tpu.matmul %76, %3, %cst_28 {dimension_numbers = #tpu.dot_dimension_numbers<[1], [0], [0], [1], [0, 0, 1, 1], [], []>} : vector<8x256xf32>, vector<256x256xf32>, vector<8x256xf32> -> vector<8x256xf32>
    %78 = vector.broadcast %10 : vector<1x256xf32> to vector<8x256xf32>
    %79 = arith.addf %77, %78 : vector<8x256xf32>
    %80 = tpu.iota {dimensions = array<i32: 1>} : vector<8x256xi32>
    %c4_i32 = arith.constant 4 : i32
    %81 = vector.broadcast %c4_i32 : i32 to vector<8x256xi32>
    %82 = arith.cmpi slt, %80, %81 : vector<8x256xi32>
    %cst_29 = arith.constant -1.000000e+30 : f32
    %83 = vector.broadcast %cst_29 : f32 to vector<8x256xf32>
    %84 = arith.select %82, %79, %83 : vector<8x256xi1>, vector<8x256xf32>
    %cst_30 = arith.constant dense<0xFF800000> : vector<8xf32>
    %85 = vector.multi_reduction <maximumf>, %84, %cst_30 [1] : vector<8x256xf32> to vector<8xf32>
    %86 = vector.shape_cast %85 : vector<8xf32> to vector<8x1xf32>
    %87 = vector.broadcast %86 : vector<8x1xf32> to vector<8x256xf32>
    %88 = arith.subf %84, %87 : vector<8x256xf32>
    %89 = math.exp %88 : vector<8x256xf32>
    %cst_31 = arith.constant dense<0.000000e+00> : vector<8xf32>
    %90 = vector.multi_reduction <add>, %89, %cst_31 [1] : vector<8x256xf32> to vector<8xf32>
    %91 = vector.shape_cast %90 : vector<8xf32> to vector<8x1xf32>
    %92 = tpu.reciprocal %91 : vector<8x1xf32> -> vector<8x1xf32>
    %93 = math.log %91 : vector<8x1xf32>
    %94 = arith.addf %93, %86 : vector<8x1xf32>
    %95 = vector.broadcast %94 : vector<8x1xf32> to vector<8x256xf32>
    %96 = arith.subf %84, %95 : vector<8x256xf32>
    %c0_32 = arith.constant 0 : index
    %c0_33 = arith.constant 0 : index
    %97 = vector.load %arg1[%c0_32, %c0_33] : memref<8x1xi32, #tpu.memory_space<vmem>>, vector<8x1xi32>
    %98 = vector.broadcast %97 : vector<8x1xi32> to vector<8x256xi32>
    %99 = arith.cmpi eq, %80, %98 : vector<8x256xi32>
    %cst_34 = arith.constant 0.000000e+00 : f32
    %100 = vector.broadcast %cst_34 : f32 to vector<8x256xf32>
    %101 = arith.select %99, %96, %100 : vector<8x256xi1>, vector<8x256xf32>
    %cst_35 = arith.constant dense<0.000000e+00> : vector<8xf32>
    %102 = vector.multi_reduction <add>, %101, %cst_35 [1] : vector<8x256xf32> to vector<8xf32>
    %103 = vector.shape_cast %102 : vector<8xf32> to vector<8x1xf32>
    %104 = arith.mulf %89, %96 : vector<8x256xf32>
    %cst_36 = arith.constant dense<0.000000e+00> : vector<8xf32>
    %105 = vector.multi_reduction <add>, %104, %cst_36 [1] : vector<8x256xf32> to vector<8xf32>
    %106 = vector.shape_cast %105 : vector<8xf32> to vector<8x1xf32>
    %cst_37 = arith.constant 0.000000e+00 : f32
    %107 = vector.broadcast %cst_37 : f32 to vector<8x1xf32>
    %108 = arith.subf %107, %106 : vector<8x1xf32>
    %109 = arith.mulf %108, %92 : vector<8x1xf32>
    %c128_i32_38 = arith.constant 128 : i32
    %110 = vector.broadcast %c128_i32_38 : i32 to vector<8x256xi32>
    %111 = arith.cmpi eq, %80, %110 : vector<8x256xi32>
    %cst_39 = arith.constant 0.000000e+00 : f32
    %112 = vector.broadcast %cst_39 : f32 to vector<8x256xf32>
    %113 = arith.select %111, %79, %112 : vector<8x256xi1>, vector<8x256xf32>
    %cst_40 = arith.constant dense<0.000000e+00> : vector<8xf32>
    %114 = vector.multi_reduction <add>, %113, %cst_40 [1] : vector<8x256xf32> to vector<8xf32>
    %115 = vector.shape_cast %114 : vector<8xf32> to vector<8x1xf32>
    %116 = tpu.iota {dimensions = array<i32: 1>} : vector<8x3xi32>
    %c0_i32 = arith.constant 0 : i32
    %117 = vector.broadcast %c0_i32 : i32 to vector<8x3xi32>
    %118 = arith.cmpi eq, %116, %117 : vector<8x3xi32>
    %c1_i32 = arith.constant 1 : i32
    %119 = vector.broadcast %c1_i32 : i32 to vector<8x3xi32>
    %120 = arith.cmpi eq, %116, %119 : vector<8x3xi32>
    %121 = vector.shape_cast %115 : vector<8x1xf32> to vector<8x1xf32>
    %122 = vector.broadcast %121 : vector<8x1xf32> to vector<8x3xf32>
    %123 = vector.shape_cast %109 : vector<8x1xf32> to vector<8x1xf32>
    %124 = vector.broadcast %123 : vector<8x1xf32> to vector<8x3xf32>
    %125 = arith.select %120, %122, %124 : vector<8x3xi1>, vector<8x3xf32>
    %126 = vector.shape_cast %103 : vector<8x1xf32> to vector<8x1xf32>
    %127 = vector.broadcast %126 : vector<8x1xf32> to vector<8x3xf32>
    %128 = arith.select %118, %127, %125 : vector<8x3xi1>, vector<8x3xf32>
    %c0_41 = arith.constant 0 : index
    %c0_42 = arith.constant 0 : index
    %129 = vector.load %arg3[%c0_41, %c0_42] : memref<8x3xf32, #tpu.memory_space<vmem>>, vector<8x3xf32>
    tpu.vector_store %arg3[%c0_41, %c0_42], %128 {strides = array<i32>} : memref<8x3xf32, #tpu.memory_space<vmem>>, vector<8x3xf32>,
    return
  }
}

</mosaic_0001>

<bundles_post_ra>
// kernel: actor_critic_evaluate.1
= control target key start
LH: loop header
LB: loop body
LE: loop exit
PB: predicated region body
PF: predicated region fallthrough
CT: control target
= control target key end

     0   :  { %8 = vsyncpa [#allocation3], 0  ;;  %s931_s12 = smov [#allocation2]   ;;  %s1033_s0 = inlined_call_operand.vmem [shape: f32[8,16], index: 0, kind: input, shape index: {}]   ;;  %s1034_s1 = inlined_call_operand.vmem [shape: s32[8,1], index: 1, kind: input, shape index: {}]   ;;  %s1035_s2 = inlined_call_operand.hbm [shape: f32[536,256], index: 2, kind: input, shape index: {}]   ;;  %s1036_s3 = inlined_call_operand.vmem [shape: f32[8,3], index: 3, kind: output, shape index: {}]  }
   0x1   :  { %s18_s13 = sshll.u32 %s931_s12, 4  ;;  %s907_s16 = scalar_lea.hbm %s1035_s2, 17152  ;;  %s19_s13 = int_to_ptr.vmem [resolvable:$true] %s18_s13 }
   0x2   :  { %p908_p0 = scmp.ne.s32.totalorder %s1035_s2, %s907_s16  ;;  %p911_p1 = scmp.lt.u32.totalorder %s907_s16, %s1035_s2 }
   0x4   :  { %p913_p2 = pnand %p911_p1, %p908_p0 }
   0x6   :  { %916 = shalt.err (!%p913_p2)
}
   0x7   :  { %s917_s21 = scalar_lea.vmem %s19_s13, 17152  ;;  %p922_p4 = scmp.lt.s32.totalorder %s19_s13, %s19_s13 }
   0x8   :  { %p918_p3 = scmp.ne.s32.totalorder %s19_s13, %s917_s21  ;;  %p923_p5 = scmp.lt.s32.totalorder %s917_s21, %s917_s21 }
   0xa   :  { %p924_p6 = por %p923_p5, %p922_p4 }
   0xc   :  { %p925_p7 = pnand %p924_p6, %p918_p3 }
   0xe   :  { %928 = shalt.err (!%p925_p7)
}
   0xf   :  { %s932_s22 = smov 256   ;;  %s933_s23 = smov 16  }
  0x10   :  { %24 = dma.hbm_to_vmem [thread:$0]  %s1035_s2, 17152, %s19_s13, [#allocation3], %s932_s22, %s932_s22, %s933_s23  }
  0x11   :  { %929 = dma.done.wait [#allocation3], 17152  }
  0x12   :  { %930 = vsyncadd [#allocation3], 4294950144  ;;  %v934_v0 = vmov 0.0   ;;  %v30_v1 = vld [vmem:[#allocation2 + $0x8] sm:$0xff]  ;;  %v32_v2 = vld [vmem:[#allocation2 + $0x18] sm:$0xff]  ;;  %vm195_vm0 = vcmask 130048  }
  0x13   :  { %263 = vmatprep.mubr.f32.mxu0 %v934_v0  ;;  %v29_v3 = vld [vmem:[#allocation2] sm:$0xff]  ;;  %v742_v4 = vpack.c.bf16 %v32_v2, %v30_v1  ;;  %v31_v5 = vld [vmem:[#allocation2 + $0x10] sm:$0xff]  ;;  %v34_v8 = vld [vmem:[#allocation2 + $0x28] sm:$0xff]  ;;  %vm734_vm8 = vcmask 23552  }
  0x14   :  { %v744_v6 = vpack.c.bf16 %v31_v5, %v29_v3  ;;  %v28_v7 = vld [vmem:[%s1033_s0] sm:$0xff]  ;;  %v36_v9 = vld [vmem:[#allocation2 + $0x38] sm:$0xff]  ;;  %v35_v12 = vld [vmem:[#allocation2 + $0x30] sm:$0xff] }
  0x15   :  { %743 = vmatprep.subr.bf16.mxu0 %v742_v4  ;;  %v746_v10 = vpack.c.bf16 %v36_v9, %v34_v8  ;;  %v33_v11 = vld [vmem:[#allocation2 + $0x20] sm:$0xff]  ;;  %v38_v14 = vld [vmem:[#allocation2 + $0x48] sm:$0xff]  ;;  %v40_v15 = vld [vmem:[#allocation2 + $0x58] sm:$0xff] }
  0x16   :  { %745 = vmatpush1.bf16.msra.mxu0 %v744_v6  ;;  %v748_v13 = vpack.c.bf16 %v35_v12, %v33_v11  ;;  %v750_v16 = vpack.c.bf16 %v40_v15, %v38_v14  ;;  %v37_v17 = vld [vmem:[#allocation2 + $0x40] sm:$0xff]  ;;  %v39_v18 = vld [vmem:[#allocation2 + $0x50] sm:$0xff]  ;;  %v42_v20 = vld [vmem:[#allocation2 + $0x68] sm:$0xff] }
  0x17   :  { %747 = vmatprep.subr.bf16.mxu1 %v746_v10  ;;  %v752_v19 = vpack.c.bf16 %v39_v18, %v37_v17  ;;  %v44_v21 = vld [vmem:[#allocation2 + $0x78] sm:$0xff]  ;;  %v41_v23 = vld [vmem:[#allocation2 + $0x60] sm:$0xff]  ;;  %v43_v24 = vld [vmem:[#allocation2 + $0x70] sm:$0xff] }
  0x18   :  { %749 = vmatpush1.bf16.msra.mxu1 %v748_v13  ;;  %v754_v22 = vpack.c.bf16 %v44_v21, %v42_v20  ;;  %v756_v25 = vpack.c.bf16 %v43_v24, %v41_v23  ;;  %v46_v26 = vld [vmem:[#allocation2 + $0x88] sm:$0xff]  ;;  %v48_v27 = vld [vmem:[#allocation2 + $0x98] sm:$0xff]  ;;  %v45_v29 = vld [vmem:[#allocation2 + $0x80] sm:$0xff] }
  0x19   :  { %741 = vmatmul.mubr.msk.f32.vlgmr.msra.gmra.mrb[0].mxu0 %vm195_vm0, %v28_v7  ;;  %751 = vmatprep.subr.bf16.mxu1 %v750_v16  ;;  %v758_v28 = vpack.c.bf16 %v48_v27, %v46_v26  ;;  %v47_v30 = vld [vmem:[#allocation2 + $0x90] sm:$0xff]  ;;  %v50_v32 = vld [vmem:[#allocation2 + $0xa8] sm:$0xff]  ;;  %v52_v33 = vld [vmem:[#allocation2 + $0xb8] sm:$0xff] }
  0x1a   :  { %v760_v31 = vpack.c.bf16 %v47_v30, %v45_v29  ;;  %v762_v34 = vpack.c.bf16 %v52_v33, %v50_v32  ;;  %v49_v35 = vld [vmem:[#allocation2 + $0xa0] sm:$0xff]  ;;  %v51_v36 = vld [vmem:[#allocation2 + $0xb0] sm:$0xff]  ;;  %v54_v38 = vld [vmem:[#allocation2 + $0xc8] sm:$0xff] }
  0x1b   :  { %v764_v37 = vpack.c.bf16 %v51_v36, %v49_v35  ;;  %v56_v39 = vld [vmem:[#allocation2 + $0xd8] sm:$0xff]  ;;  %v53_v40 = vld [vmem:[#allocation2 + $0xc0] sm:$0xff]  ;;  %v55_v42 = vld [vmem:[#allocation2 + $0xd0] sm:$0xff] }
  0x1c   :  { %753 = vmatpush1.bf16.msra.mxu1 %v752_v19  ;;  %v766_v41 = vpack.c.bf16 %v56_v39, %v54_v38  ;;  %v58_v43 = vld [vmem:[#allocation2 + $0xe8] sm:$0xff]  ;;  %v60_v44 = vld [vmem:[#allocation2 + $0xf8] sm:$0xff]  ;;  %v768_v45 = vpack.c.bf16 %v55_v42, %v53_v40  ;;  %v57_v47 = vld [vmem:[#allocation2 + $0xe0] sm:$0xff] }
  0x1d   :  { %755 = vmatprep.subr.bf16.mxu1 %v754_v22  ;;  %v770_v46 = vpack.c.bf16 %v60_v44, %v58_v43  ;;  %v59_v48 = vld [vmem:[#allocation2 + $0xf0] sm:$0xff]  ;;  %v62_v49 = vld [vmem:[#allocation2 + $0x108] sm:$0xff]  ;;  %v64_v50 = vld [vmem:[#allocation2 + $0x118] sm:$0xff] }
  0x1e   :  { %v772_v51 = vpack.c.bf16 %v59_v48, %v57_v47  ;;  %v774_v52 = vpack.c.bf16 %v64_v50, %v62_v49  ;;  %v61_v53 = vld [vmem:[#allocation2 + $0x100] sm:$0xff]  ;;  %v63_v54 = vld [vmem:[#allocation2 + $0x110] sm:$0xff]  ;;  %v66_v55 = vld [vmem:[#allocation2 + $0x128] sm:$0xff] }
  0x1f   :  { %v68_v56 = vld [vmem:[#allocation2 + $0x138] sm:$0xff]  ;;  %v776_v57 = vpack.c.bf16 %v63_v54, %v61_v53  ;;  %v65_v59 = vld [vmem:[#allocation2 + $0x120] sm:$0xff]  ;;  %v67_v60 = vld [vmem:[#allocation2 + $0x130] sm:$0xff] }
  0x20   :  { %757 = vmatpush1.bf16.msra.mxu1 %v756_v25  ;;  %v778_v58 = vpack.c.bf16 %v68_v56, %v66_v55  ;;  %v70_v61 = vld [vmem:[#allocation2 + $0x148] sm:$0xff]  ;;  %v72_v62 = vld [vmem:[#allocation2 + $0x158] sm:$0xff]  ;;  %v780_v63 = vpack.c.bf16 %v67_v60, %v65_v59  ;;  %v69_v2 = vld [vmem:[#allocation2 + $0x140] sm:$0xff] }
  0x21   :  { %759 = vmatprep.subr.bf16.mxu1 %v758_v28  ;;  %v782_v1 = vpack.c.bf16 %v72_v62, %v70_v61  ;;  %v71_v3 = vld [vmem:[#allocation2 + $0x150] sm:$0xff]  ;;  %v74_v4 = vld [vmem:[#allocation2 + $0x168] sm:$0xff]  ;;  %v76_v5 = vld [vmem:[#allocation2 + $0x178] sm:$0xff] }
  0x22   :  { %v784_v6 = vpack.c.bf16 %v71_v3, %v69_v2  ;;  %v786_v7 = vpack.c.bf16 %v76_v5, %v74_v4  ;;  %v73_v8 = vld [vmem:[#allocation2 + $0x160] sm:$0xff]  ;;  %v75_v9 = vld [vmem:[#allocation2 + $0x170] sm:$0xff]  ;;  %v78_v10 = vld [vmem:[#allocation2 + $0x188] sm:$0xff] }
  0x23   :  { %v80_v11 = vld [vmem:[#allocation2 + $0x198] sm:$0xff]  ;;  %v788_v12 = vpack.c.bf16 %v75_v9, %v73_v8  ;;  %v77_v14 = vld [vmem:[#allocation2 + $0x180] sm:$0xff]  ;;  %v79_v15 = vld [vmem:[#allocation2 + $0x190] sm:$0xff] }
  0x24   :  { %761 = vmatpush1.bf16.msra.mxu1 %v760_v31  ;;  %v790_v13 = vpack.c.bf16 %v80_v11, %v78_v10  ;;  %v82_v16 = vld [vmem:[#allocation2 + $0x1a8] sm:$0xff]  ;;  %v84_v17 = vld [vmem:[#allocation2 + $0x1b8] sm:$0xff]  ;;  %v792_v18 = vpack.c.bf16 %v79_v15, %v77_v14  ;;  %v81_v20 = vld [vmem:[#allocation2 + $0x1a0] sm:$0xff] }
  0x25   :  { %763 = vmatprep.subr.bf16.mxu1 %v762_v34  ;;  %v794_v19 = vpack.c.bf16 %v84_v17, %v82_v16  ;;  %v83_v21 = vld [vmem:[#allocation2 + $0x1b0] sm:$0xff]  ;;  %v86_v22 = vld [vmem:[#allocation2 + $0x1c8] sm:$0xff]  ;;  %v88_v23 = vld [vmem:[#allocation2 + $0x1d8] sm:$0xff] }
  0x26   :  { %v796_v24 = vpack.c.bf16 %v83_v21, %v81_v20  ;;  %v798_v25 = vpack.c.bf16 %v88_v23, %v86_v22  ;;  %v85_v26 = vld [vmem:[#allocation2 + $0x1c0] sm:$0xff]  ;;  %v87_v27 = vld [vmem:[#allocation2 + $0x1d0] sm:$0xff]  ;;  %v90_v28 = vld [vmem:[#allocation2 + $0x1e8] sm:$0xff]  ;;  %v935_v23 = vmov 1966171168  }
  0x27   :  { %v92_v29 = vld [vmem:[#allocation2 + $0x1f8] sm:$0xff]  ;;  %v800_v30 = vpack.c.bf16 %v87_v27, %v85_v26  ;;  %v89_v32 = vld [vmem:[#allocation2 + $0x1e0] sm:$0xff]  ;;  %v91_v33 = vld [vmem:[#allocation2 + $0x1f0] sm:$0xff] }
  0x28   :  { %765 = vmatpush1.bf16.msra.mxu1 %v764_v37  ;;  %v802_v31 = vpack.c.bf16 %v92_v29, %v90_v28  ;;  %v94_v34 = vld [vmem:[#allocation2 + $0x208] sm:$0xff]  ;;  %v96_v35 = vld [vmem:[#allocation2 + $0x218] sm:$0xff]  ;;  %v804_v36 = vpack.c.bf16 %v91_v33, %v89_v32  ;;  %v93_v38 = vld [vmem:[#allocation2 + $0x200] sm:$0xff] }
  0x29   :  { %767 = vmatprep.subr.bf16.mxu1 %v766_v41  ;;  %v806_v37 = vpack.c.bf16 %v96_v35, %v94_v34  ;;  %v95_v39 = vld [vmem:[#allocation2 + $0x210] sm:$0xff]  ;;  %v175_v41 = vlaneseq  ;;  %v162_v44 = vld [vmem:[#allocation2 + $0x420] ss:$8 sm:$0x3] }
  0x2a   :  { %v808_v40 = vpack.c.bf16 %v95_v39, %v93_v38 }
  0x2b   :  { %v186_v42 = vshrl.u32 %v175_v41, 7 }
  0x2c   :  { %769 = vmatpush1.bf16.msra.mxu1 %v768_v45 }
  0x2d   :  { %771 = vmatprep.subr.bf16.mxu1 %v770_v46  ;;  %v975_v43 = vsub.s32 0, %v186_v42  ;;  %v977_v45 = vsub.s32 1, %v186_v42 }
  0x2f   :  { %v188_v46 = vrot.slane %v162_v44, %v975_v43  ;;  %v192_v47 = vrot.slane %v162_v44, %v977_v45  ;;  %v166_v44 = vld [vmem:[#allocation2 + $0x422] ss:$8 sm:$0x3] }
  0x30   :  { %773 = vmatpush1.bf16.msra.mxu1 %v772_v51 }
  0x31   :  { %775 = vmatprep.subr.bf16.mxu1 %v774_v52 }
  0x34   :  { %777 = vmatpush1.bf16.msra.mxu1 %v776_v57 }
  0x35   :  { %779 = vmatprep.subr.bf16.mxu1 %v778_v58 }
  0x38   :  { %781 = vmatpush1.bf16.msra.mxu1 %v780_v63 }
  0x39   :  { %783 = vmatprep.subr.bf16.mxu1 %v782_v1 }
  0x3c   :  { %785 = vmatpush1.bf16.msra.mxu1 %v784_v6 }
  0x3d   :  { %787 = vmatprep.subr.bf16.mxu1 %v786_v7 }
  0x40   :  { %789 = vmatpush1.bf16.msra.mxu1 %v788_v12 }
  0x41   :  { %791 = vmatprep.subr.bf16.mxu1 %v790_v13 }
  0x44   :  { %793 = vmatpush1.bf16.msra.mxu1 %v792_v18 }
  0x45   :  { %795 = vmatprep.subr.bf16.mxu1 %v794_v19 }
  0x48   :  { %797 = vmatpush1.bf16.msra.mxu1 %v796_v24  ;;  %v311_v24 = vunpack.c.l.s4 %v935_v23  ;;  %v120_v23 = vld [vmem:[#allocation2 + $0x2d8] sm:$0xff] }
  0x49   :  { %799 = vmatprep.subr.bf16.mxu1 %v798_v25 }
  0x4a   :  { %v312_v25 = vunpack.c.0.s8 %v311_v24 }
  0x4c   :  { %801 = vmatpush1.bf16.msra.mxu1 %v800_v30  ;;  %v981_v27 = vsub.s32 %v312_v25, %v186_v42  ;;  %v117_v25 = vld [vmem:[#allocation2 + $0x2c0] sm:$0xff] }
  0x4d   :  { %803 = vmatprep.subr.bf16.mxu1 %v802_v31  ;;  %v164_v31 = vld [vmem:[#allocation2 + $0x421] ss:$8 sm:$0x3] }
  0x50   :  { %805 = vmatpush1.bf16.msra.mxu1 %v804_v36 }
  0x51   :  { %807 = vmatprep.subr.bf16.mxu1 %v806_v37 }
  0x54   :  { %809 = vmatpush1.bf16.msra.mxu1 %v808_v40  ;;  %v936_v40 = vmov 1.0  }
  0x55   :  { %v989_v42 = vrot.slane %v936_v40, %v975_v43 }
  0xec   :  { %v265_v48 = vpop.f32.mrb[0].mxu0 }
  0xed   :  { %v266_v49 = vadd.f32 %v265_v48, %v188_v46  ;;  %v267_v50 = vpop.f32.mrb[1].mxu0  ;;  %v994_v48 = vrot.slane %v934_v0, %v975_v43  ;;  %v97_v0 = vld [vmem:[#allocation2 + $0x220] sm:$0xff] }
  0xee   :  { %v268_v51 = vadd.f32 %v267_v50, %v192_v47 }
  0xef   :  { %v270_v52 = vrot.slane %v266_v49, 4  ;;  %v381_v50 = vmul.f32 %v989_v42, %v266_v49 }
  0xf0   :  { %v276_v53 = vrot.slane %v268_v51, 4 }
  0xf1   :  { %v271_v54 = vadd.f32 %v270_v52, %v266_v49 }
  0xf2   :  { %v277_v55 = vadd.f32 %v276_v53, %v268_v51  ;;  %v391_v53 = vadd.f32 %v994_v48, %v381_v50  ;;  %v129_v50 = vld [vmem:[#allocation2 + $0x320] sm:$0xff] }
  0xf3   :  { %v272_v56 = vrot.slane %v271_v54, 2 }
  0xf4   :  { %v278_v57 = vrot.slane %v277_v55, 2 }
  0xf5   :  { %v273_v58 = vadd.f32 %v272_v56, %v271_v54 }
  0xf6   :  { %v279_v59 = vadd.f32 %v278_v57, %v277_v55  ;;  %v98_v57 = vld [vmem:[#allocation2 + $0x228] sm:$0xff] }
  0xf7   :  { %v274_v60 = vrot.slane %v273_v58, 1 }
  0xf8   :  { %v280_v61 = vrot.slane %v279_v59, 1 }
  0xf9   :  { %v275_v62 = vadd.f32 %v274_v60, %v273_v58  ;;  %v100_v58 = vld [vmem:[#allocation2 + $0x238] sm:$0xff]  ;;  %v99_v60 = vld [vmem:[#allocation2 + $0x230] sm:$0xff] }
  0xfa   :  { %v281_v63 = vadd.f32 %v280_v61, %v279_v59  ;;  %v810_v59 = vpack.c.bf16 %v100_v58, %v98_v57  ;;  %v812_v61 = vpack.c.bf16 %v99_v60, %v97_v0  ;;  %v135_v57 = vld [vmem:[#allocation2 + $0x350] sm:$0xff]  ;;  %v140_v0 = vld [vmem:[#allocation2 + $0x378] sm:$0xff] }
  0xfb   :  { %v283_v1 = vmul.f32 0.125, %v275_v62  ;;  %v104_v62 = vld [vmem:[#allocation2 + $0x258] sm:$0xff] }
  0xfc   :  { %v284_v2 = vmul.f32 0.125, %v281_v63  ;;  %811 = vmatprep.subr.bf16.mxu0 %v810_v59  ;;  %v138_v59 = vld [vmem:[#allocation2 + $0x368] sm:$0xff] }
  0xfd   :  { %v285_v3 = vsub.f32 %v266_v49, %v283_v1  ;;  %813 = vmatpush1.bf16.msra.mxu0 %v812_v61  ;;  %v102_v49 = vld [vmem:[#allocation2 + $0x248] sm:$0xff]  ;;  %v850_v60 = vpack.c.bf16 %v140_v0, %v138_v59  ;;  %v137_v61 = vld [vmem:[#allocation2 + $0x360] sm:$0xff] }
  0xfe   :  { %v286_v4 = vsub.f32 %v268_v51, %v284_v2  ;;  %v814_v63 = vpack.c.bf16 %v104_v62, %v102_v49  ;;  %v139_v49 = vld [vmem:[#allocation2 + $0x370] sm:$0xff] }
  0xff   :  { %v287_v5 = vmul.f32 %v285_v3, %v285_v3  ;;  %v852_v62 = vpack.c.bf16 %v139_v49, %v137_v61 }
 0x100   :  { %v288_v6 = vmul.f32 %v286_v4, %v286_v4  ;;  %815 = vmatprep.subr.bf16.mxu0 %v814_v63  ;;  %v106_v4 = vld [vmem:[#allocation2 + $0x268] sm:$0xff] }
 0x101   :  { %v289_v7 = vrot.slane %v287_v5, 4  ;;  %v142_v63 = vld [vmem:[#allocation2 + $0x388] sm:$0xff] }
 0x102   :  { %v295_v8 = vrot.slane %v288_v6, 4 }
 0x103   :  { %v290_v9 = vadd.f32 %v289_v7, %v287_v5  ;;  %v108_v5 = vld [vmem:[#allocation2 + $0x278] sm:$0xff]  ;;  %v105_v7 = vld [vmem:[#allocation2 + $0x260] sm:$0xff] }
 0x104   :  { %v296_v10 = vadd.f32 %v295_v8, %v288_v6  ;;  %v818_v6 = vpack.c.bf16 %v108_v5, %v106_v4  ;;  %v107_v8 = vld [vmem:[#allocation2 + $0x270] sm:$0xff] }
 0x105   :  { %v291_v11 = vrot.slane %v290_v9, 2  ;;  %v143_v4 = vld [vmem:[#allocation2 + $0x390] sm:$0xff] }
 0x106   :  { %v297_v12 = vrot.slane %v296_v10, 2 }
 0x107   :  { %v292_v13 = vadd.f32 %v291_v11, %v290_v9  ;;  %v820_v9 = vpack.c.bf16 %v107_v8, %v105_v7  ;;  %v112_v11 = vld [vmem:[#allocation2 + $0x298] sm:$0xff] }
 0x108   :  { %v298_v14 = vadd.f32 %v297_v12, %v296_v10  ;;  %v110_v10 = vld [vmem:[#allocation2 + $0x288] sm:$0xff]  ;;  %v148_v7 = vld [vmem:[#allocation2 + $0x3b8] sm:$0xff] }
 0x109   :  { %v293_v15 = vrot.slane %v292_v13, 1  ;;  %v822_v12 = vpack.c.bf16 %v112_v11, %v110_v10  ;;  %v147_v10 = vld [vmem:[#allocation2 + $0x3b0] sm:$0xff] }
 0x10a   :  { %v299_v16 = vrot.slane %v298_v14, 1 }
 0x10b   :  { %v294_v17 = vadd.f32 %v293_v15, %v292_v13  ;;  %v109_v13 = vld [vmem:[#allocation2 + $0x280] sm:$0xff] }
 0x10c   :  { %v300_v18 = vadd.f32 %v299_v16, %v298_v14  ;;  %v111_v14 = vld [vmem:[#allocation2 + $0x290] sm:$0xff]  ;;  %v114_v16 = vld [vmem:[#allocation2 + $0x2a8] sm:$0xff] }
 0x10d   :  { %v301_v19 = vmul.f32 0.125, %v294_v17  ;;  %v824_v15 = vpack.c.bf16 %v111_v14, %v109_v13  ;;  %v116_v17 = vld [vmem:[#allocation2 + $0x2b8] sm:$0xff] }
 0x10e   :  { %v302_v20 = vmul.f32 0.125, %v300_v18  ;;  %v826_v18 = vpack.c.bf16 %v116_v17, %v114_v16  ;;  %v152_v13 = vld [vmem:[#allocation2 + $0x3d8] sm:$0xff]  ;;  %v151_v16 = vld [vmem:[#allocation2 + $0x3d0] sm:$0xff] }
 0x10f   :  { %v303_v21 = vadd.f32 1e-05, %v301_v19  ;;  %v113_v19 = vld [vmem:[#allocation2 + $0x2a0] sm:$0xff] }
 0x110   :  { %v304_v22 = vadd.f32 1e-05, %v302_v20  ;;  %v115_v20 = vld [vmem:[#allocation2 + $0x2b0] sm:$0xff] }
 0x111   :  { %883 = vrsqrt.f32 %v303_v21  ;;  %v828_v21 = vpack.c.bf16 %v115_v20, %v113_v19  ;;  %v156_v19 = vld [vmem:[#allocation2 + $0x3f8] sm:$0xff]  ;;  %v153_v20 = vld [vmem:[#allocation2 + $0x3e0] sm:$0xff] }
 0x112   :  { %885 = vrsqrt.f32 %v304_v22  ;;  %v118_v22 = vld [vmem:[#allocation2 + $0x2c8] sm:$0xff] }
 0x113   :  { %v830_v24 = vpack.c.bf16 %v120_v23, %v118_v22  ;;  %v155_v22 = vld [vmem:[#allocation2 + $0x3f0] sm:$0xff]  ;;  %v158_v23 = vld [vmem:[#allocation2 + $0x408] sm:$0xff] }
 0x11b   :  { %v884_v26 = vpop.eup %883 }
 0x11c   :  { %v886_v28 = vpop.eup %885 }
 0x11d   :  { %v309_v29 = vcombine.low %v884_v26, %v886_v28  ;;  %v119_v26 = vld [vmem:[#allocation2 + $0x2d0] sm:$0xff] }
 0x11e   :  { %v832_v28 = vpack.c.bf16 %v119_v26, %v117_v25  ;;  %v868_v25 = vpack.c.bf16 %v155_v22, %v153_v20 }
 0x11f   :  { %v316_v30 = vrot.slane %v309_v29, %v981_v27  ;;  %v122_v29 = vld [vmem:[#allocation2 + $0x2e8] sm:$0xff] }
 0x121   :  { %v323_v32 = vrot.slane %v316_v30, %v981_v27  ;;  %v124_v30 = vld [vmem:[#allocation2 + $0x2f8] sm:$0xff] }
 0x123   :  { %v325_v33 = vmul.f32 %v323_v32, %v164_v31  ;;  %v834_v31 = vpack.c.bf16 %v124_v30, %v122_v29  ;;  %v121_v32 = vld [vmem:[#allocation2 + $0x2e0] sm:$0xff]  ;;  %v159_v29 = vld [vmem:[#allocation2 + $0x410] sm:$0xff] }
 0x125   :  { %v334_v34 = vrot.slane %v325_v33, %v977_v45  ;;  %v123_v33 = vld [vmem:[#allocation2 + $0x2f0] sm:$0xff] }
 0x127   :  { %v340_v35 = vmul.f32 %v334_v34, %v284_v2  ;;  %v380_v36 = vrot.slane %v334_v34, %v975_v43  ;;  %v103_v2 = vld [vmem:[#allocation2 + $0x250] sm:$0xff]  ;;  %v836_v34 = vpack.c.bf16 %v123_v33, %v121_v32 }
 0x129   :  { %v343_v37 = vcombine.low %v283_v1, %v340_v35  ;;  %v382_v38 = vmul.f32 %v380_v36, %v268_v51  ;;  %v101_v1 = vld [vmem:[#allocation2 + $0x240] sm:$0xff]  ;;  %v126_v35 = vld [vmem:[#allocation2 + $0x308] sm:$0xff]  ;;  %v128_v36 = vld [vmem:[#allocation2 + $0x318] sm:$0xff] }
 0x12a   :  { %v816_v3 = vpack.c.bf16 %v103_v2, %v101_v1  ;;  %v144_v1 = vld [vmem:[#allocation2 + $0x398] sm:$0xff] }
 0x12b   :  { %v350_v39 = vrot.slane %v343_v37, %v981_v27  ;;  %v838_v37 = vpack.c.bf16 %v128_v36, %v126_v35  ;;  %v854_v2 = vpack.c.bf16 %v144_v1, %v142_v63 }
 0x12c   :  { %817 = vmatpush1.bf16.msra.mxu0 %v816_v3  ;;  %v141_v3 = vld [vmem:[#allocation2 + $0x380] sm:$0xff] }
 0x12d   :  { %v357_v46 = vrot.slane %v350_v39, %v981_v27  ;;  %819 = vmatprep.subr.bf16.mxu0 %v818_v6  ;;  %v127_v39 = vld [vmem:[#allocation2 + $0x310] sm:$0xff]  ;;  %v856_v5 = vpack.c.bf16 %v143_v4, %v141_v3  ;;  %v146_v6 = vld [vmem:[#allocation2 + $0x3a8] sm:$0xff] }
 0x12e   :  { %v858_v8 = vpack.c.bf16 %v148_v7, %v146_v6 }
 0x12f   :  { %v359_v47 = vsub.f32 %v166_v44, %v357_v46  ;;  %v130_v44 = vld [vmem:[#allocation2 + $0x328] sm:$0xff]  ;;  %v132_v46 = vld [vmem:[#allocation2 + $0x338] sm:$0xff] }
 0x130   :  { %821 = vmatpush1.bf16.msra.mxu0 %v820_v9  ;;  %v145_v9 = vld [vmem:[#allocation2 + $0x3a0] sm:$0xff] }
 0x131   :  { %v368_v52 = vrot.slane %v359_v47, %v977_v45  ;;  %823 = vmatprep.subr.bf16.mxu0 %v822_v12  ;;  %v842_v47 = vpack.c.bf16 %v132_v46, %v130_v44  ;;  %v860_v11 = vpack.c.bf16 %v147_v10, %v145_v9  ;;  %v150_v12 = vld [vmem:[#allocation2 + $0x3c8] sm:$0xff] }
 0x132   :  { %v862_v14 = vpack.c.bf16 %v152_v13, %v150_v12 }
 0x133   :  { %v390_v51 = vrot.slane %v368_v52, %v975_v43  ;;  %v131_v52 = vld [vmem:[#allocation2 + $0x330] sm:$0xff] }
 0x134   :  { %825 = vmatpush1.bf16.msra.mxu0 %v824_v15  ;;  %v149_v15 = vld [vmem:[#allocation2 + $0x3c0] sm:$0xff] }
 0x135   :  { %v392_v54 = vadd.f32 %v390_v51, %v382_v38  ;;  %827 = vmatprep.subr.bf16.mxu0 %v826_v18  ;;  %v125_v38 = vld [vmem:[#allocation2 + $0x300] sm:$0xff]  ;;  %v844_v51 = vpack.c.bf16 %v131_v52, %v129_v50  ;;  %v864_v17 = vpack.c.bf16 %v151_v16, %v149_v15  ;;  %v154_v18 = vld [vmem:[#allocation2 + $0x3e8] sm:$0xff]  ;;  %v1003_v15 = vand.u32 127, %v175_v41 }
 0x136   :  { %v840_v40 = vpack.c.bf16 %v127_v39, %v125_v38 }
 0x137   :  { %887 = vtanh.f32 %v392_v54  ;;  %v136_v54 = vld [vmem:[#allocation2 + $0x358] sm:$0xff]  ;;  %vm683_vm2 = vcmp.lt.s32.totalorder %v1003_v15, 4  ;;  %vm731_vm6 = vcmp.eq.s32.totalorder %v1003_v15, 1  ;;  %vm730_vm7 = vcmp.eq.s32.totalorder %v1003_v15, 0 }
 0x138   :  { %889 = vtanh.f32 %v391_v53  ;;  %829 = vmatpush1.bf16.msra.mxu0 %v828_v21  ;;  %v134_v53 = vld [vmem:[#allocation2 + $0x348] sm:$0xff]  ;;  %v866_v21 = vpack.c.bf16 %v156_v19, %v154_v18  ;;  %v1007_v19 = vadd.s32 128, %v1003_v15 }
 0x139   :  { %831 = vmatprep.subr.bf16.mxu0 %v830_v24  ;;  %v160_v24 = vld [vmem:[#allocation2 + $0x418] sm:$0xff]  ;;  %v170_v18 = vld [vmem:[#allocation2 + $0x424] ss:$8 sm:$0x3] }
 0x13a   :  { %v870_v26 = vpack.c.bf16 %v160_v24, %v158_v23  ;;  %vm181_vm1 = vcmp.lt.s32.totalorder %v1007_v19, 160  ;;  %vm724_vm3 = vcmp.eq.s32.totalorder %v1007_v19, 128 }
 0x13c   :  { %833 = vmatpush1.bf16.msra.mxu0 %v832_v28  ;;  %v157_v28 = vld [vmem:[#allocation2 + $0x400] sm:$0xff] }
 0x13d   :  { %835 = vmatprep.subr.bf16.mxu0 %v834_v31  ;;  %v872_v30 = vpack.c.bf16 %v159_v29, %v157_v28  ;;  %v168_v31 = vld [vmem:[#allocation2 + $0x423] ss:$8 sm:$0x3]  ;;  %v172_v29 = vld [vmem:[#allocation2 + $0x425] ss:$8 sm:$0x3] }
 0x13e   :  { %v399_v32 = vrot.slane %v168_v31, %v975_v43  ;;  %v403_v33 = vrot.slane %v168_v31, %v977_v45 }
 0x140   :  { %837 = vmatpush1.bf16.msra.mxu0 %v836_v34 }
 0x141   :  { %v888_v55 = vpop.eup %887  ;;  %839 = vmatprep.subr.bf16.mxu0 %v838_v37 }
 0x142   :  { %v890_v56 = vpop.eup %889  ;;  %470 = vmatprep.mubr.f32.mxu1 %v888_v55  ;;  %v846_v55 = vpack.c.bf16 %v136_v54, %v134_v53 }
 0x143   :  { %471 = vmatmul.mubr.f32.vlgmr.msra.gmra.mrb[0].mxu1 %v890_v56  ;;  %v133_v56 = vld [vmem:[#allocation2 + $0x340] sm:$0xff] }
 0x144   :  { %841 = vmatpush1.bf16.msra.mxu0 %v840_v40  ;;  %v848_v58 = vpack.c.bf16 %v135_v57, %v133_v56 }
 0x145   :  { %843 = vmatprep.subr.bf16.mxu0 %v842_v47 }
 0x148   :  { %845 = vmatpush1.bf16.msra.mxu0 %v844_v51 }
 0x149   :  { %847 = vmatprep.subr.bf16.mxu0 %v846_v55 }
 0x14c   :  { %849 = vmatpush1.bf16.msra.mxu0 %v848_v58 }
 0x14d   :  { %851 = vmatprep.subr.bf16.mxu0 %v850_v60 }
 0x150   :  { %853 = vmatpush1.bf16.msra.mxu0 %v852_v62 }
 0x151   :  { %855 = vmatprep.subr.bf16.mxu0 %v854_v2 }
 0x154   :  { %857 = vmatpush1.bf16.msra.mxu0 %v856_v5 }
 0x155   :  { %859 = vmatprep.subr.bf16.mxu0 %v858_v8 }
 0x158   :  { %861 = vmatpush1.bf16.msra.mxu0 %v860_v11 }
 0x159   :  { %863 = vmatprep.subr.bf16.mxu0 %v862_v14 }
 0x15c   :  { %865 = vmatpush1.bf16.msra.mxu0 %v864_v17 }
 0x15d   :  { %867 = vmatprep.subr.bf16.mxu0 %v866_v21 }
 0x160   :  { %869 = vmatpush1.bf16.msra.mxu0 %v868_v25 }
 0x161   :  { %871 = vmatprep.subr.bf16.mxu0 %v870_v26 }
 0x164   :  { %873 = vmatpush1.bf16.msra.mxu0 %v872_v30 }
 0x216   :  { %v472_v34 = vpop.f32.mrb[0].mxu1 }
 0x217   :  { %v473_v35 = vadd.f32 %v472_v34, %v399_v32  ;;  %v474_v36 = vpop.f32.mrb[1].mxu1 }
 0x218   :  { %v475_v37 = vadd.f32 %v474_v36, %v403_v33 }
 0x219   :  { %v477_v38 = vrot.slane %v473_v35, 4  ;;  %v587_v32 = vmul.f32 %v473_v35, %v989_v42 }
 0x21a   :  { %v483_v39 = vrot.slane %v475_v37, 4 }
 0x21b   :  { %v478_v40 = vadd.f32 %v477_v38, %v473_v35  ;;  %v597_v38 = vadd.f32 %v587_v32, %v994_v48  ;;  %v705_v48 = vld [vmem:[%s1034_s1] sm:$0xff] }
 0x21c   :  { %v484_v44 = vadd.f32 %v483_v39, %v475_v37 }
 0x21d   :  { %v479_v46 = vrot.slane %v478_v40, 2 }
 0x21e   :  { %v485_v47 = vrot.slane %v484_v44, 2 }
 0x21f   :  { %v480_v50 = vadd.f32 %v479_v46, %v478_v40 }
 0x220   :  { %v486_v52 = vadd.f32 %v485_v47, %v484_v44  ;;  %v174_v44 = vld [vmem:[#allocation2 + $0x426] ss:$8 sm:$0x3] }
 0x221   :  { %v481_v51 = vrot.slane %v480_v50, 1 }
 0x222   :  { %v487_v53 = vrot.slane %v486_v52, 1 }
 0x223   :  { %v482_v54 = vadd.f32 %v481_v51, %v480_v50 }
 0x224   :  { %v488_v55 = vadd.f32 %v487_v53, %v486_v52  ;;  %v937_v52 = vmov 0  }
 0x225   :  { %v489_v56 = vmul.f32 0.125, %v482_v54  ;;  %881 = vset.pattern.permute.xlu1 %v937_v52  ;;  %882 = vset.pattern.permute.xlu0 %v937_v52 }
 0x226   :  { %v490_v57 = vmul.f32 0.125, %v488_v55  ;;  %707 = vperm.xlu1 %881, %v705_v48  }
 0x227   :  { %v491_v58 = vsub.f32 %v473_v35, %v489_v56 }
 0x228   :  { %v492_v59 = vsub.f32 %v475_v37, %v490_v57 }
 0x229   :  { %v493_v0 = vmul.f32 %v491_v58, %v491_v58 }
 0x22a   :  { %v494_v60 = vmul.f32 %v492_v59, %v492_v59 }
 0x22b   :  { %v495_v61 = vrot.slane %v493_v0, 4 }
 0x22c   :  { %v501_v49 = vrot.slane %v494_v60, 4 }
 0x22d   :  { %v496_v62 = vadd.f32 %v495_v61, %v493_v0 }
 0x22e   :  { %v502_v63 = vadd.f32 %v501_v49, %v494_v60 }
 0x22f   :  { %v497_v1 = vrot.slane %v496_v62, 2 }
 0x230   :  { %v503_v2 = vrot.slane %v502_v63, 2 }
 0x231   :  { %v498_v3 = vadd.f32 %v497_v1, %v496_v62 }
 0x232   :  { %v504_v4 = vadd.f32 %v503_v2, %v502_v63 }
 0x233   :  { %v499_v5 = vrot.slane %v498_v3, 1 }
 0x234   :  { %v505_v6 = vrot.slane %v504_v4, 1 }
 0x235   :  { %v500_v7 = vadd.f32 %v499_v5, %v498_v3 }
 0x236   :  { %v506_v8 = vadd.f32 %v505_v6, %v504_v4 }
 0x237   :  { %v507_v9 = vmul.f32 0.125, %v500_v7 }
 0x238   :  { %v508_v10 = vmul.f32 0.125, %v506_v8 }
 0x239   :  { %v509_v11 = vadd.f32 1e-05, %v507_v9 }
 0x23a   :  { %v510_v12 = vadd.f32 1e-05, %v508_v10 }
 0x23b   :  { %891 = vrsqrt.f32 %v509_v11 }
 0x23c   :  { %893 = vrsqrt.f32 %v510_v12 }
 0x245   :  { %v892_v13 = vpop.eup %891 }
 0x246   :  { %v894_v14 = vpop.eup %893 }
 0x247   :  { %v515_v16 = vcombine.low %v892_v13, %v894_v14 }
 0x249   :  { %v522_v17 = vrot.slane %v515_v16, %v981_v27 }
 0x24b   :  { %v529_v20 = vrot.slane %v522_v17, %v981_v27 }
 0x24d   :  { %v531_v21 = vmul.f32 %v529_v20, %v170_v18 }
 0x24f   :  { %v540_v22 = vrot.slane %v531_v21, %v977_v45 }
 0x251   :  { %v544_v23 = vsel %vm181_vm1, %v540_v22, 1.0 }
 0x252   :  { %v546_v24 = vmul.f32 %v544_v23, %v490_v57  ;;  %v586_v25 = vrot.slane %v544_v23, %v975_v43 }
 0x254   :  { %v549_v41 = vcombine.low %v489_v56, %v546_v24  ;;  %v588_v26 = vmul.f32 %v586_v25, %v475_v37  ;;  %v609_v56 = vrot.slane %v174_v44, %v977_v45 }
 0x256   :  { %v556_v28 = vrot.slane %v549_v41, %v981_v27 }
 0x258   :  { %v563_v30 = vrot.slane %v556_v28, %v981_v27  ;;  %v605_v27 = vrot.slane %v174_v44, %v975_v43 }
 0x25a   :  { %v565_v31 = vsub.f32 %v172_v29, %v563_v30 }
 0x25c   :  { %v574_v33 = vrot.slane %v565_v31, %v977_v45 }
 0x25e   :  { %v578_v34 = vsel %vm181_vm1, %v574_v33, 0.0 }
 0x25f   :  { %v596_v36 = vrot.slane %v578_v34, %v975_v43 }
 0x261   :  { %v598_v39 = vadd.f32 %v596_v36, %v588_v26 }
 0x263   :  { %895 = vtanh.f32 %v598_v39 }
 0x264   :  { %897 = vtanh.f32 %v597_v38 }
 0x26d   :  { %v896_v40 = vpop.eup %895 }
 0x26e   :  { %v898_v37 = vpop.eup %897  ;;  %676 = vmatprep.mubr.f32.mxu0 %v896_v40 }
 0x26f   :  { %677 = vmatmul.mubr.f32.vlgmr.msra.gmra.mrb[2].mxu0 %v898_v37 }
 0x2a5   :  { %v708_v63 = vpop.permute.xlu1 %707 }
 0x2a6   :  { %vm709_vm4 = vcmp.eq.s32.totalorder %v1003_v15, %v708_v63  ;;  %vm710_vm5 = vcmp.eq.s32.totalorder %v1007_v19, %v708_v63 }
 0x342   :  { %v678_v46 = vpop.f32.mrb[2].mxu0 }
 0x343   :  { %v679_v42 = vadd.f32 %v678_v46, %v605_v27  ;;  %v680_v35 = vpop.f32.mrb[3].mxu0 }
 0x344   :  { %v681_v0 = vadd.f32 %v680_v35, %v609_v56 }
 0x345   :  { %v685_v47 = vsel %vm683_vm2, %v679_v42, -1e+30 }
 0x346   :  { %v687_v50 = vmax.f32 %v685_v47, -1e+30  ;;  %v726_v60 = vsel %vm724_vm3, %v681_v0, 0.0 }
 0x348   :  { %688 = vmax.xlane.f32.xlu0 %v687_v50 }
 0x3d5   :  { %v689_v51 = vpop.xlane.xlu0 %688 }
 0x3d6   :  { %v690_v53 = vsub.f32 %v685_v47, %v689_v51  ;;  %v691_v54 = vsub.f32 -1e+30, %v689_v51 }
 0x3d8   :  { %v692_v43 = vmul.f32 1.442695, %v690_v53  ;;  %v694_v55 = vmul.f32 1.442695, %v691_v54 }
 0x3da   :  { %899 = vpow2.f32 %v692_v43 }
 0x3db   :  { %901 = vpow2.f32 %v694_v55 }
 0x3e4   :  { %v900_v57 = vpop.eup %899 }
 0x3e5   :  { %v902_v58 = vpop.eup %901 }
 0x3e6   :  { %v696_v59 = vadd.f32 %v902_v58, %v900_v57 }
 0x3e8   :  { %697 = vadd.xlane.f32.xlu0 %v696_v59 }
 0x3ec   :  { %728 = vadd.xlane.f32.xlu0 %v726_v60 }
 0x475   :  { %v698_v61 = vpop.xlane.xlu0 %697 }
 0x476   :  { %903 = vlog2.f32 %v698_v61 }
 0x477   :  { %905 = vrcp.f32 %v698_v61 }
 0x479   :  { %v729_v10 = vpop.xlane.xlu0 %728 }
 0x480   :  { %v904_v49 = vpop.eup %903 }
 0x481   :  { %v701_v62 = vmul.f32 0.6931472, %v904_v49  ;;  %v906_v12 = vpop.eup %905 }
 0x483   :  { %v702_v1 = vadd.f32 %v701_v62, %v689_v51 }
 0x485   :  { %v703_v45 = vsub.f32 %v685_v47, %v702_v1  ;;  %v704_v2 = vsub.f32 -1e+30, %v702_v1 }
 0x487   :  { %v711_v3 = vsel %vm709_vm4, %v703_v45, 0.0  ;;  %v712_v4 = vsel %vm710_vm5, %v704_v2, 0.0  ;;  %v716_v5 = vmul.f32 %v900_v57, %v703_v45  ;;  %v717_v6 = vmul.f32 %v902_v58, %v704_v2 }
 0x488   :  { %v713_v7 = vadd.f32 %v712_v4, %v711_v3 }
 0x489   :  { %v718_v8 = vadd.f32 %v717_v6, %v716_v5 }
 0x48a   :  { %714 = vadd.xlane.f32.xlu0 %v713_v7 }
 0x48b   :  { %719 = vadd.xlane.f32.xlu1 %v718_v8 }
 0x517   :  { %v715_v14 = vpop.xlane.xlu0 %714 }
 0x518   :  { %v720_v9 = vpop.xlane.xlu1 %719 }
 0x519   :  { %v721_v11 = vsub.f32 0.0, %v720_v9 }
 0x51b   :  { %v722_v13 = vmul.f32 %v906_v12, %v721_v11 }
 0x51d   :  { %v732_v16 = vsel %vm731_vm6, %v729_v10, %v722_v13 }
 0x51e   :  { %v733_v17 = vsel %vm730_vm7, %v715_v14, %v732_v16 }
 0x51f   :  { %735 = vst.msk [vmem:[%s1036_s3] sm:$0xff] %vm734_vm8, %v733_v17 }
 0x520   :  { %740 = vsyncpa [#allocation3], 1 }

</bundles_post_ra>
